<compile_context>
chip_gen: v7x
topology: tpu7x:2x2x1
jax: 0.10.0
libtpu: 0.0.40
codegen_flags: <defaults>
</compile_context>

<pallas_src>
import functools

import numpy as np
import jax
import jax.numpy as jnp
from jax.experimental import pallas as pl
from jax.experimental.pallas import tpu as pltpu

# ----------------------------- config (synthetic) ---------------------------
NUM_CLASS = 3
NUM_ANCHORS_PER_LOC = 6          # 3 sizes x 2 rotations
CODE_SIZE = 7
NUM_DIR_BINS = 2                 # kernel #1 specializes argmax to 2 bins
DIR_OFFSET = 0.78539
DIR_LIMIT_OFFSET = 0.0
POINT_CLOUD_RANGE = np.array([0.0, -8.0, -3.0, 16.0, 8.0, 1.0], np.float32)
VOXEL_SIZE = np.array([0.5, 0.5, 4.0], np.float32)
BEV_STRIDE = 2.0

LANE = 128

_PERIOD = float(2.0 * np.pi / NUM_DIR_BINS)


# ----------------------- kernel #1: box decode + dir -------------------------
def _box_decode_dir_kernel(box_ref, anc_ref, dir_ref, out_ref):
    """Decode one (N-tile, batch) block, channel-major.

    box_ref: (1, 7, TNB, 128) bf16   dir_ref: (1, 2, TNB, 128) bf16
    anc_ref: (7, TNB, 128) f32       out_ref: (1, 7, TNB, 128) f32

    Every per-channel slice is a dense (TNB, 128) tile -> full sublane + lane
    utilization, unmasked stores.  bf16 inputs are upcast right at the load;
    all arithmetic stays f32 (v5e VPU/EUP have no bf16).
    """
    f32 = jnp.float32

    # x / y need `diag` live across two outputs; everything else is loaded
    # adjacent to its single use to keep live ranges short.
    dxa = anc_ref[3]
    dya = anc_ref[4]
    diag = jnp.sqrt(dxa * dxa + dya * dya)
    out_ref[0, 0] = box_ref[0, 0].astype(f32) * diag + anc_ref[0]
    out_ref[0, 1] = box_ref[0, 1].astype(f32) * diag + anc_ref[1]

    dza = anc_ref[5]
    out_ref[0, 2] = box_ref[0, 2].astype(f32) * dza + anc_ref[2]
    out_ref[0, 3] = jnp.exp(box_ref[0, 3].astype(f32)) * dxa
    out_ref[0, 4] = jnp.exp(box_ref[0, 4].astype(f32)) * dya
    out_ref[0, 5] = jnp.exp(box_ref[0, 5].astype(f32)) * dza

    # direction bin + limit_period correction.
    # NUM_DIR_BINS == 2 specialization: (d1 > d0) matches argmax tie-breaking.
    rg = box_ref[0, 6].astype(f32) + anc_ref[6]
    d0 = dir_ref[0, 0].astype(f32)
    d1 = dir_ref[0, 1].astype(f32)
    dir_labels = (d1 > d0).astype(f32)
    period = np.float32(_PERIOD)
    inv_period = np.float32(1.0 / _PERIOD)     # strength-reduced: mul, not div
    off = np.float32(DIR_OFFSET)
    val = rg - off
    dir_rot = val - jnp.floor(val * inv_period + np.float32(DIR_LIMIT_OFFSET)) * period
    out_ref[0, 6] = dir_rot + off + period * dir_labels


def _choose_tiles(nb_rows, batch, max_rows=256):
    """Return (nb_padded, tile_rows).

    * nb_rows <= max_rows: full-extent tile (always legal), except when B==1
      where the N axis is split in two (if sublane-aligned) so v7x's second
      TensorCore gets work.
    * nb_rows > max_rows: fixed tile of `max_rows` rows and N padded up to a
      multiple of it -> deterministic VMEM footprint on every generation
      (no full-extent fallback that could exceed v7x's 64 MiB VMEM).
    """
    if nb_rows <= max_rows:
        if batch == 1 and nb_rows >= 16 and nb_rows % 16 == 0:
            return nb_rows, nb_rows // 2      # >=2 grid steps for v7x megacore
        return nb_rows, nb_rows
    tnb = max_rows                            # multiple of 8 by construction
    nb_pad = ((nb_rows + tnb - 1) // tnb) * tnb
    return nb_pad, tnb


def generate_predicted_boxes(cls_preds, box_preds_cm, dir_preds_cm, anchors_cm,
                             max_tile_rows=256):
    """
    Args:
      cls_preds:    (B, H, W, A*num_class) -- decode is reshape+cast only, no kernel.
      box_preds_cm: (B, 7, N//128, 128) bf16 channel-major box regression as
                    emitted by the head.
      dir_preds_cm: (B, NUM_DIR_BINS, N//128, 128) bf16
      anchors_cm:   (7, N//128, 128) f32 constant, prepared channel-major on host.
    Returns:
      batch_cls_preds:    (B, N, num_class) float32
      batch_box_preds_cm: (B, 7, N) float32 channel-major.
    max_tile_rows=256 (32768 anchors/tile, ~5 MiB double-buffered) is safe on
    v5e/v6e/v7x; v6e can raise it to 512-1024 together with vmem_limit_bytes.
    """
    b = box_preds_cm.shape[0]
    nb = box_preds_cm.shape[2]
    n = nb * LANE
    batch_cls_preds = cls_preds.reshape(b, n, -1).astype(jnp.float32)

    nb_pad, tnb = _choose_tiles(nb, b, max_tile_rows)
    if nb_pad != nb:
        pad4 = [(0, 0), (0, 0), (0, nb_pad - nb), (0, 0)]
        box_p = jnp.pad(box_preds_cm, pad4)
        dir_p = jnp.pad(dir_preds_cm, pad4)
        anc_p = jnp.pad(anchors_cm, [(0, 0), (0, nb_pad - nb), (0, 0)])
    else:
        box_p, dir_p, anc_p = box_preds_cm, dir_preds_cm, anchors_cm

    # Grid: N-tile OUTER, batch INNER -> the anchors block index (0, j, 0) is
    # unchanged across consecutive (batch) steps, so Pallas skips re-DMAing
    # the anchor tile for every batch element.
    grid = (nb_pad // tnb, b)

    out = pl.pallas_call(
        _box_decode_dir_kernel,
        out_shape=jax.ShapeDtypeStruct((b, CODE_SIZE, nb_pad, LANE), jnp.float32),
        grid_spec=pltpu.PrefetchScalarGridSpec(
            num_scalar_prefetch=0,
            grid=grid,
            in_specs=[
                pl.BlockSpec((1, CODE_SIZE, tnb, LANE), lambda j, i: (i, 0, j, 0)),
                pl.BlockSpec((CODE_SIZE, tnb, LANE), lambda j, i: (0, j, 0)),
                pl.BlockSpec((1, NUM_DIR_BINS, tnb, LANE), lambda j, i: (i, 0, j, 0)),
            ],
            out_specs=pl.BlockSpec((1, CODE_SIZE, tnb, LANE), lambda j, i: (i, 0, j, 0)),
        ),
        compiler_params=pltpu.CompilerParams(
            dimension_semantics=("parallel", "parallel"),
            vmem_limit_bytes=32 * 1024 * 1024),
    )(box_p, anc_p, dir_p)

    batch_box_preds_cm = out.reshape(b, CODE_SIZE, nb_pad * LANE)
    if nb_pad != nb:
        batch_box_preds_cm = batch_box_preds_cm[:, :, :n]
    return batch_cls_preds, batch_box_preds_cm


# -------------------- kernel #2: get_center_preds gather ---------------------
def _center_gather_kernel(idx_ref, bev_hbm, out_ref, strips, sem, *, kp_blk, nk):
    """Coalesced 5-point gather for one block of keypoints.

    idx_ref: SMEM int32 (B*NK*8,): per keypoint
             [strip_a_row, strip_b_row, ib_row, oa0, oa1, ob0, ob1, pad]
    bev_hbm: (B*H*W, C) f32 -- stays in HBM (pl.ANY).
    out_ref: (1, kp_blk*5, C) VMEM output block. Tap order per keypoint:
             [Ia, Ib, Ie, Ic, Id] (matches torch get_center_preds).
    strips:  VMEM (kp_blk*12, C): per keypoint, 6 rows for row-y0 strip then
             6 rows for row-y2 strip.
    sem:     DMA semaphores (kp_blk, 3)

    3 DMAs per keypoint: two 6-row contiguous strips (y0-row covering x0..x1,
    y2-row covering x2..x0) land in scratch, the lone (y1,x0) row is DMA'd
    straight into the output block.  SMEM scalars are read before any wait.
    """
    b = pl.program_id(0)
    t = pl.program_id(1)
    base = (b * nk + t * kp_blk) * 8

    strip_copies = []
    ib_copies = []
    offs = []
    for k in range(kp_blk):                      # static unroll (small)
        o = base + k * 8
        base_a = idx_ref[o + 0]
        base_b = idx_ref[o + 1]
        row_ib = idx_ref[o + 2]
        offs.append((idx_ref[o + 3], idx_ref[o + 4],
                     idx_ref[o + 5], idx_ref[o + 6]))
        ca = pltpu.make_async_copy(bev_hbm.at[pl.ds(base_a, 6)],
                                   strips.at[pl.ds(k * 12, 6)], sem.at[k, 0])
        cb = pltpu.make_async_copy(bev_hbm.at[pl.ds(base_b, 6)],
                                   strips.at[pl.ds(k * 12 + 6, 6)], sem.at[k, 1])
        ci = pltpu.make_async_copy(bev_hbm.at[row_ib],
                                   out_ref.at[0, k * 5 + 1], sem.at[k, 2])
        ca.start()
        cb.start()
        ci.start()
        strip_copies.append((ca, cb))
        ib_copies.append(ci)

    for k in range(kp_blk):
        ca, cb = strip_copies[k]
        ca.wait()
        cb.wait()
        oa0, oa1, ob0, ob1 = offs[k]
        # Ia = strip_a[x0-sxa], Ic = strip_a[x1-sxa]
        out_ref[0, k * 5 + 0] = strips[k * 12 + oa0]
        out_ref[0, k * 5 + 3] = strips[k * 12 + oa1]
        # Ie = strip_b[x0-sxb], Id = strip_b[x2-sxb]
        out_ref[0, k * 5 + 2] = strips[k * 12 + 6 + ob1]
        out_ref[0, k * 5 + 4] = strips[k * 12 + 6 + ob0]
    for ci in ib_copies:
        ci.wait()


def interpolate_from_bev_features(keypoints, bev_features, bev_stride, kp_blk=32):
    """keypoints: (B, NK, 3); bev_features: (B, H, W, C) channels-last.
    Returns (B, NK, 5*C) matching torch get_center_preds (Ia, Ib, Ie, Ic, Id)."""
    b, nk, _ = keypoints.shape
    _, h, w, c = bev_features.shape
    assert w >= 6  # TODO(synk): fall back to per-tap gather for tiny BEV maps
    kp_blk = min(kp_blk, nk)
    assert nk % kp_blk == 0  # TODO(synk): remainder handling for ragged NK

    # Index math: O(B*NK) scalar work done once here, shipped to SMEM via
    # scalar prefetch.  Taps sharing a BEV row are coalesced into contiguous
    # 6-column strips so the kernel issues 3 DMAs per keypoint instead of 5.
    x = (keypoints[:, :, 0] - POINT_CLOUD_RANGE[0]) / VOXEL_SIZE[0] / bev_stride
    y = (keypoints[:, :, 1] - POINT_CLOUD_RANGE[1]) / VOXEL_SIZE[1] / bev_stride
    x0 = jnp.floor(x).astype(jnp.int32)
    y0 = jnp.floor(y).astype(jnp.int32)
    x1c = jnp.clip(x0 + 5, 0, w - 1)
    x2c = jnp.clip(x0 - 5, 0, w - 1)
    y1c = jnp.clip(y0 + 5, 0, h - 1)
    y2c = jnp.clip(y0 - 5, 0, h - 1)
    x0c = jnp.clip(x0, 0, w - 1)
    y0c = jnp.clip(y0, 0, h - 1)

    # Strip starts chosen so both needed columns fall inside a 6-wide window
    # that never crosses the row end (x0c>=x2c and x1c>=x0c, both diffs <=5).
    sxa = jnp.clip(x0c, 0, w - 6)       # y0-row strip covers [sxa, sxa+5]
    sxb = jnp.clip(x2c, 0, w - 6)       # y2-row strip covers [sxb, sxb+5]
    boff = (jnp.arange(b, dtype=jnp.int32) * (h * w))[:, None]
    base_a = boff + y0c * w + sxa       # flat row of strip_a start
    base_b = boff + y2c * w + sxb       # flat row of strip_b start
    row_ib = boff + y1c * w + x0c       # flat row of the lone (y1, x0) tap
    oa0 = x0c - sxa                     # Ia column within strip_a
    oa1 = x1c - sxa                     # Ic column within strip_a
    ob0 = x2c - sxb                     # Id column within strip_b
    ob1 = x0c - sxb                     # Ie column within strip_b
    pad = jnp.zeros_like(oa0)
    scalars = jnp.stack([base_a, base_b, row_ib, oa0, oa1, ob0, ob1, pad],
                        axis=-1)                                  # (B, NK, 8)
    flat_idx = scalars.reshape(-1).astype(jnp.int32)              # (B*NK*8,)
    # TODO(synk): for very large B*NK, block this SMEM index array per grid
    # step (or compute indices in-kernel) to bound SMEM usage.

    bev_flat = bev_features.reshape(b * h * w, c)   # view; stays HBM-resident

    kernel = functools.partial(_center_gather_kernel, kp_blk=kp_blk, nk=nk)
    out = pl.pallas_call(
        kernel,
        out_shape=jax.ShapeDtypeStruct((b, nk * 5, c), jnp.float32),
        grid_spec=pltpu.PrefetchScalarGridSpec(
            num_scalar_prefetch=1,
            grid=(b, nk // kp_blk),
            in_specs=[pl.BlockSpec(memory_space=pl.ANY)],
            out_specs=pl.BlockSpec((1, kp_blk * 5, c),
                                   lambda i, j, idx: (i, j, 0)),
            scratch_shapes=[pltpu.VMEM((kp_blk * 12, c), jnp.float32),
                            pltpu.SemaphoreType.DMA((kp_blk, 3))],
        ),
        compiler_params=pltpu.CompilerParams(
            dimension_semantics=("parallel", "parallel")),
    )(flat_idx, bev_flat)
    return out.reshape(b, nk, 5 * c)


# ------------------------------- anchors (constant) ---------------------------
def build_anchors(h, w):
    """Deterministic synthetic anchors: numpy (h*w*NUM_ANCHORS_PER_LOC, 7)."""
    xs = np.linspace(POINT_CLOUD_RANGE[0], POINT_CLOUD_RANGE[3], w, dtype=np.float32)
    ys = np.linspace(POINT_CLOUD_RANGE[1], POINT_CLOUD_RANGE[4], h, dtype=np.float32)
    sizes = np.array([[3.9, 1.6, 1.56], [0.8, 0.6, 1.73], [1.76, 0.6, 1.73]], np.float32)
    rots = np.array([0.0, np.pi / 2], np.float32)
    yy, xx = np.meshgrid(ys, xs, indexing="ij")
    per_type = []
    for s in sizes:
        for r in rots:
            a = np.stack([xx, yy, np.full_like(xx, -1.0),
                          np.full_like(xx, s[0]), np.full_like(xx, s[1]),
                          np.full_like(xx, s[2]), np.full_like(xx, r)], axis=-1)
            per_type.append(a.reshape(h * w, 7))
    anchors = np.stack(per_type, axis=1).reshape(-1, 7)   # (h*w*6, 7)
    return anchors.astype(np.float32)


def anchors_to_channel_major(anchors_n7):
    """Host-side (numpy) constant preparation: (N,7) -> (7, N//128, 128)."""
    n = anchors_n7.shape[0]
    assert n % LANE == 0
    return jnp.asarray(np.ascontiguousarray(anchors_n7.T).reshape(CODE_SIZE, n // LANE, LANE))


# ------------------------------ pure-JAX references ---------------------------
def _ref_decode(cls_preds, box_rows, dir_rows, anchors):
    """box_rows: (B,N,7) f32, dir_rows: (B,N,2) f32, anchors: (N,7)."""
    b, n, _ = box_rows.shape
    anc = jnp.broadcast_to(anchors[None], (b, n, CODE_SIZE))
    xa, ya, za, dxa, dya, dza, ra = jnp.split(anc, 7, axis=-1)
    xt, yt, zt, dxt, dyt, dzt, rt = jnp.split(box_rows, 7, axis=-1)
    diag = jnp.sqrt(dxa ** 2 + dya ** 2)
    boxes = jnp.concatenate([xt * diag + xa, yt * diag + ya, zt * dza + za,
                             jnp.exp(dxt) * dxa, jnp.exp(dyt) * dya,
                             jnp.exp(dzt) * dza, rt + ra], axis=-1)
    dir_labels = jnp.argmax(dir_rows, axis=-1).astype(jnp.float32)
    period = 2.0 * np.pi / NUM_DIR_BINS
    val = boxes[..., 6] - DIR_OFFSET
    dir_rot = val - jnp.floor(val / period + DIR_LIMIT_OFFSET) * period
    boxes = boxes.at[..., 6].set(dir_rot + DIR_OFFSET + period * dir_labels)
    return cls_preds.reshape(b, n, -1).astype(jnp.float32), boxes


def _ref_interp(keypoints, bev_features, bev_stride):
    b, nk, _ = keypoints.shape
    _, h, w, c = bev_features.shape
    x = (keypoints[:, :, 0] - POINT_CLOUD_RANGE[0]) / VOXEL_SIZE[0] / bev_stride
    y = (keypoints[:, :, 1] - POINT_CLOUD_RANGE[1]) / VOXEL_SIZE[1] / bev_stride
    x0 = jnp.floor(x).astype(jnp.int32)
    y0 = jnp.floor(y).astype(jnp.int32)
    x1 = jnp.clip(x0 + 5, 0, w - 1)
    x2 = jnp.clip(x0 - 5, 0, w - 1)
    y1 = jnp.clip(y0 + 5, 0, h - 1)
    y2 = jnp.clip(y0 - 5, 0, h - 1)
    x0 = jnp.clip(x0, 0, w - 1)
    y0 = jnp.clip(y0, 0, h - 1)
    outs = []
    for k in range(b):
        im = bev_features[k]
        ia = im[y0[k], x0[k]]
        ib = im[y1[k], x0[k]]
        ie = im[y2[k], x0[k]]
        ic = im[y0[k], x1[k]]
        idd = im[y2[k], x2[k]]
        outs.append(jnp.concatenate([ia, ib, ie, ic, idd], axis=-1)[None])
    return jnp.concatenate(outs, axis=0)


# ----------------------------------- main --------------------------------------
if __name__ == "__main__":
    B, H, W = 2, 16, 16
    C_BEV = 32
    NK = 8
    N_ANCHORS = H * W * NUM_ANCHORS_PER_LOC        # 1536
    NB = N_ANCHORS // LANE                         # 12

    key = jax.random.PRNGKey(0)
    k1, k2, k3, k4, k5 = jax.random.split(key, 5)

    # cls head output (layout-agnostic: decode is just a reshape + float cast)
    cls_preds = jax.random.normal(
        k1, (B, H, W, NUM_ANCHORS_PER_LOC * NUM_CLASS), dtype=jnp.float32)
    # box/dir head outputs, emitted channel-major in bf16 by the JAX head.
    box_preds_cm = (0.1 * jax.random.normal(
        k2, (B, CODE_SIZE, NB, LANE), dtype=jnp.float32)).astype(jnp.bfloat16)
    dir_preds_cm = jax.random.normal(
        k3, (B, NUM_DIR_BINS, NB, LANE), dtype=jnp.float32).astype(jnp.bfloat16)

    bev_features = jax.random.normal(k4, (B, H, W, C_BEV), dtype=jnp.float32)
    kp_unit = jax.random.uniform(k5, (B, NK, 3), dtype=jnp.float32)
    keypoints = kp_unit * jnp.asarray(
        POINT_CLOUD_RANGE[3:6] - POINT_CLOUD_RANGE[0:3]) + jnp.asarray(POINT_CLOUD_RANGE[0:3])

    anchors_np = build_anchors(H, W)                       # (N, 7) host constant
    anchors_cm = anchors_to_channel_major(anchors_np)      # (7, NB, 128)

    # ---- run Pallas kernels ----
    batch_cls_preds, batch_box_preds_cm = generate_predicted_boxes(
        cls_preds, box_preds_cm, dir_preds_cm, anchors_cm)
    point_bev_features = interpolate_from_bev_features(
        keypoints, bev_features, BEV_STRIDE)

    jax.block_until_ready((batch_cls_preds, batch_box_preds_cm, point_bev_features))

    # ---- reference check (layout conversions below are harness-only) ----
    box_rows = jnp.transpose(
        box_preds_cm.astype(jnp.float32).reshape(B, CODE_SIZE, N_ANCHORS), (0, 2, 1))
    dir_rows = jnp.transpose(
        dir_preds_cm.astype(jnp.float32).reshape(B, NUM_DIR_BINS, N_ANCHORS), (0, 2, 1))
    ref_cls, ref_boxes = _ref_decode(cls_preds, box_rows, dir_rows, jnp.asarray(anchors_np))
    ref_interp = _ref_interp(keypoints, bev_features, BEV_STRIDE)

    got_boxes = jnp.transpose(batch_box_preds_cm, (0, 2, 1))   # (B, N, 7) for check

    np.testing.assert_allclose(np.asarray(batch_cls_preds), np.asarray(ref_cls),
                               rtol=1e-4, atol=1e-4)
    np.testing.assert_allclose(np.asarray(got_boxes), np.asarray(ref_boxes),
                               rtol=1e-4, atol=1e-4)
    np.testing.assert_allclose(np.asarray(point_bev_features), np.asarray(ref_interp),
                               rtol=1e-4, atol=1e-4)

    assert batch_cls_preds.shape == (B, N_ANCHORS, NUM_CLASS)
    assert batch_box_preds_cm.shape == (B, CODE_SIZE, N_ANCHORS)
    assert point_bev_features.shape == (B, NK, 5 * C_BEV)
    print("KERNEL_OK")
</pallas_src>

<mosaic_0001>
module attributes {stable_mosaic.version = 11 : i64} {
  func.func @_box_decode_dir_kernel(%arg0: i32, %arg1: i32, %arg2: memref<1x7x12x128xbf16, #tpu.memory_space<vmem>>, %arg3: memref<7x12x128xf32, #tpu.memory_space<vmem>>, %arg4: memref<1x2x12x128xbf16, #tpu.memory_space<vmem>>, %arg5: memref<1x7x12x128xf32, #tpu.memory_space<vmem>>) attributes {dimension_semantics = [#tpu.dimension_semantics<parallel>, #tpu.dimension_semantics<parallel>], iteration_bounds = array<i64: 1, 2>, scalar_prefetch = 0 : i64, scratch_operands = 0 : i64, tpu.core_type = #tpu.core_type<tc>, window_params = [{transform_indices = @transform_0, window_bounds = array<i64: 1, 7, 12, 128>}, {transform_indices = @transform_1, window_bounds = array<i64: 7, 12, 128>}, {transform_indices = @transform_2, window_bounds = array<i64: 1, 2, 12, 128>}, {transform_indices = @transform_3, window_bounds = array<i64: 1, 7, 12, 128>}]} {
    %c3 = arith.constant 3 : index
    %c0 = arith.constant 0 : index
    %c0_0 = arith.constant 0 : index
    %0 = vector.load %arg3[%c3, %c0, %c0_0] : memref<7x12x128xf32, #tpu.memory_space<vmem>>, vector<1x12x128xf32>
    %1 = vector.shape_cast %0 : vector<1x12x128xf32> to vector<12x128xf32>
    %c4 = arith.constant 4 : index
    %c0_1 = arith.constant 0 : index
    %c0_2 = arith.constant 0 : index
    %2 = vector.load %arg3[%c4, %c0_1, %c0_2] : memref<7x12x128xf32, #tpu.memory_space<vmem>>, vector<1x12x128xf32>
    %3 = vector.shape_cast %2 : vector<1x12x128xf32> to vector<12x128xf32>
    %4 = arith.mulf %1, %1 : vector<12x128xf32>
    %5 = arith.mulf %3, %3 : vector<12x128xf32>
    %6 = arith.addf %4, %5 : vector<12x128xf32>
    %7 = math.sqrt %6 : vector<12x128xf32>
    %c0_3 = arith.constant 0 : index
    %c0_4 = arith.constant 0 : index
    %c0_5 = arith.constant 0 : index
    %c0_6 = arith.constant 0 : index
    %8 = vector.load %arg2[%c0_3, %c0_4, %c0_5, %c0_6] : memref<1x7x12x128xbf16, #tpu.memory_space<vmem>>, vector<1x1x12x128xbf16>
    %9 = vector.shape_cast %8 : vector<1x1x12x128xbf16> to vector<12x128xbf16>
    %10 = arith.extf %9 : vector<12x128xbf16> to vector<12x128xf32>
    %11 = arith.mulf %10, %7 : vector<12x128xf32>
    %c0_7 = arith.constant 0 : index
    %c0_8 = arith.constant 0 : index
    %c0_9 = arith.constant 0 : index
    %12 = vector.load %arg3[%c0_7, %c0_8, %c0_9] : memref<7x12x128xf32, #tpu.memory_space<vmem>>, vector<1x12x128xf32>
    %13 = vector.shape_cast %12 : vector<1x12x128xf32> to vector<12x128xf32>
    %14 = arith.addf %11, %13 : vector<12x128xf32>
    %c0_10 = arith.constant 0 : index
    %c0_11 = arith.constant 0 : index
    %c0_12 = arith.constant 0 : index
    %c0_13 = arith.constant 0 : index
    %15 = vector.load %arg5[%c0_10, %c0_11, %c0_12, %c0_13] : memref<1x7x12x128xf32, #tpu.memory_space<vmem>>, vector<1x1x12x128xf32>
    %16 = vector.shape_cast %15 : vector<1x1x12x128xf32> to vector<12x128xf32>
    %17 = vector.shape_cast %14 : vector<12x128xf32> to vector<1x1x12x128xf32>
    tpu.vector_store %arg5[%c0_10, %c0_11, %c0_12, %c0_13], %17 {strides = array<i32>} : memref<1x7x12x128xf32, #tpu.memory_space<vmem>>, vector<1x1x12x128xf32>,
    %c0_14 = arith.constant 0 : index
    %c1 = arith.constant 1 : index
    %c0_15 = arith.constant 0 : index
    %c0_16 = arith.constant 0 : index
    %18 = vector.load %arg2[%c0_14, %c1, %c0_15, %c0_16] : memref<1x7x12x128xbf16, #tpu.memory_space<vmem>>, vector<1x1x12x128xbf16>
    %19 = vector.shape_cast %18 : vector<1x1x12x128xbf16> to vector<12x128xbf16>
    %20 = arith.extf %19 : vector<12x128xbf16> to vector<12x128xf32>
    %21 = arith.mulf %20, %7 : vector<12x128xf32>
    %c1_17 = arith.constant 1 : index
    %c0_18 = arith.constant 0 : index
    %c0_19 = arith.constant 0 : index
    %22 = vector.load %arg3[%c1_17, %c0_18, %c0_19] : memref<7x12x128xf32, #tpu.memory_space<vmem>>, vector<1x12x128xf32>
    %23 = vector.shape_cast %22 : vector<1x12x128xf32> to vector<12x128xf32>
    %24 = arith.addf %21, %23 : vector<12x128xf32>
    %c0_20 = arith.constant 0 : index
    %c1_21 = arith.constant 1 : index
    %c0_22 = arith.constant 0 : index
    %c0_23 = arith.constant 0 : index
    %25 = vector.load %arg5[%c0_20, %c1_21, %c0_22, %c0_23] : memref<1x7x12x128xf32, #tpu.memory_space<vmem>>, vector<1x1x12x128xf32>
    %26 = vector.shape_cast %25 : vector<1x1x12x128xf32> to vector<12x128xf32>
    %27 = vector.shape_cast %24 : vector<12x128xf32> to vector<1x1x12x128xf32>
    tpu.vector_store %arg5[%c0_20, %c1_21, %c0_22, %c0_23], %27 {strides = array<i32>} : memref<1x7x12x128xf32, #tpu.memory_space<vmem>>, vector<1x1x12x128xf32>,
    %c5 = arith.constant 5 : index
    %c0_24 = arith.constant 0 : index
    %c0_25 = arith.constant 0 : index
    %28 = vector.load %arg3[%c5, %c0_24, %c0_25] : memref<7x12x128xf32, #tpu.memory_space<vmem>>, vector<1x12x128xf32>
    %29 = vector.shape_cast %28 : vector<1x12x128xf32> to vector<12x128xf32>
    %c0_26 = arith.constant 0 : index
    %c2 = arith.constant 2 : index
    %c0_27 = arith.constant 0 : index
    %c0_28 = arith.constant 0 : index
    %30 = vector.load %arg2[%c0_26, %c2, %c0_27, %c0_28] : memref<1x7x12x128xbf16, #tpu.memory_space<vmem>>, vector<1x1x12x128xbf16>
    %31 = vector.shape_cast %30 : vector<1x1x12x128xbf16> to vector<12x128xbf16>
    %32 = arith.extf %31 : vector<12x128xbf16> to vector<12x128xf32>
    %33 = arith.mulf %32, %29 : vector<12x128xf32>
    %c2_29 = arith.constant 2 : index
    %c0_30 = arith.constant 0 : index
    %c0_31 = arith.constant 0 : index
    %34 = vector.load %arg3[%c2_29, %c0_30, %c0_31] : memref<7x12x128xf32, #tpu.memory_space<vmem>>, vector<1x12x128xf32>
    %35 = vector.shape_cast %34 : vector<1x12x128xf32> to vector<12x128xf32>
    %36 = arith.addf %33, %35 : vector<12x128xf32>
    %c0_32 = arith.constant 0 : index
    %c2_33 = arith.constant 2 : index
    %c0_34 = arith.constant 0 : index
    %c0_35 = arith.constant 0 : index
    %37 = vector.load %arg5[%c0_32, %c2_33, %c0_34, %c0_35] : memref<1x7x12x128xf32, #tpu.memory_space<vmem>>, vector<1x1x12x128xf32>
    %38 = vector.shape_cast %37 : vector<1x1x12x128xf32> to vector<12x128xf32>
    %39 = vector.shape_cast %36 : vector<12x128xf32> to vector<1x1x12x128xf32>
    tpu.vector_store %arg5[%c0_32, %c2_33, %c0_34, %c0_35], %39 {strides = array<i32>} : memref<1x7x12x128xf32, #tpu.memory_space<vmem>>, vector<1x1x12x128xf32>,
    %c0_36 = arith.constant 0 : index
    %c3_37 = arith.constant 3 : index
    %c0_38 = arith.constant 0 : index
    %c0_39 = arith.constant 0 : index
    %40 = vector.load %arg2[%c0_36, %c3_37, %c0_38, %c0_39] : memref<1x7x12x128xbf16, #tpu.memory_space<vmem>>, vector<1x1x12x128xbf16>
    %41 = vector.shape_cast %40 : vector<1x1x12x128xbf16> to vector<12x128xbf16>
    %42 = arith.extf %41 : vector<12x128xbf16> to vector<12x128xf32>
    %43 = math.exp %42 : vector<12x128xf32>
    %44 = arith.mulf %43, %1 : vector<12x128xf32>
    %c0_40 = arith.constant 0 : index
    %c3_41 = arith.constant 3 : index
    %c0_42 = arith.constant 0 : index
    %c0_43 = arith.constant 0 : index
    %45 = vector.load %arg5[%c0_40, %c3_41, %c0_42, %c0_43] : memref<1x7x12x128xf32, #tpu.memory_space<vmem>>, vector<1x1x12x128xf32>
    %46 = vector.shape_cast %45 : vector<1x1x12x128xf32> to vector<12x128xf32>
    %47 = vector.shape_cast %44 : vector<12x128xf32> to vector<1x1x12x128xf32>
    tpu.vector_store %arg5[%c0_40, %c3_41, %c0_42, %c0_43], %47 {strides = array<i32>} : memref<1x7x12x128xf32, #tpu.memory_space<vmem>>, vector<1x1x12x128xf32>,
    %c0_44 = arith.constant 0 : index
    %c4_45 = arith.constant 4 : index
    %c0_46 = arith.constant 0 : index
    %c0_47 = arith.constant 0 : index
    %48 = vector.load %arg2[%c0_44, %c4_45, %c0_46, %c0_47] : memref<1x7x12x128xbf16, #tpu.memory_space<vmem>>, vector<1x1x12x128xbf16>
    %49 = vector.shape_cast %48 : vector<1x1x12x128xbf16> to vector<12x128xbf16>
    %50 = arith.extf %49 : vector<12x128xbf16> to vector<12x128xf32>
    %51 = math.exp %50 : vector<12x128xf32>
    %52 = arith.mulf %51, %3 : vector<12x128xf32>
    %c0_48 = arith.constant 0 : index
    %c4_49 = arith.constant 4 : index
    %c0_50 = arith.constant 0 : index
    %c0_51 = arith.constant 0 : index
    %53 = vector.load %arg5[%c0_48, %c4_49, %c0_50, %c0_51] : memref<1x7x12x128xf32, #tpu.memory_space<vmem>>, vector<1x1x12x128xf32>
    %54 = vector.shape_cast %53 : vector<1x1x12x128xf32> to vector<12x128xf32>
    %55 = vector.shape_cast %52 : vector<12x128xf32> to vector<1x1x12x128xf32>
    tpu.vector_store %arg5[%c0_48, %c4_49, %c0_50, %c0_51], %55 {strides = array<i32>} : memref<1x7x12x128xf32, #tpu.memory_space<vmem>>, vector<1x1x12x128xf32>,
    %c0_52 = arith.constant 0 : index
    %c5_53 = arith.constant 5 : index
    %c0_54 = arith.constant 0 : index
    %c0_55 = arith.constant 0 : index
    %56 = vector.load %arg2[%c0_52, %c5_53, %c0_54, %c0_55] : memref<1x7x12x128xbf16, #tpu.memory_space<vmem>>, vector<1x1x12x128xbf16>
    %57 = vector.shape_cast %56 : vector<1x1x12x128xbf16> to vector<12x128xbf16>
    %58 = arith.extf %57 : vector<12x128xbf16> to vector<12x128xf32>
    %59 = math.exp %58 : vector<12x128xf32>
    %60 = arith.mulf %59, %29 : vector<12x128xf32>
    %c0_56 = arith.constant 0 : index
    %c5_57 = arith.constant 5 : index
    %c0_58 = arith.constant 0 : index
    %c0_59 = arith.constant 0 : index
    %61 = vector.load %arg5[%c0_56, %c5_57, %c0_58, %c0_59] : memref<1x7x12x128xf32, #tpu.memory_space<vmem>>, vector<1x1x12x128xf32>
    %62 = vector.shape_cast %61 : vector<1x1x12x128xf32> to vector<12x128xf32>
    %63 = vector.shape_cast %60 : vector<12x128xf32> to vector<1x1x12x128xf32>
    tpu.vector_store %arg5[%c0_56, %c5_57, %c0_58, %c0_59], %63 {strides = array<i32>} : memref<1x7x12x128xf32, #tpu.memory_space<vmem>>, vector<1x1x12x128xf32>,
    %c0_60 = arith.constant 0 : index
    %c6 = arith.constant 6 : index
    %c0_61 = arith.constant 0 : index
    %c0_62 = arith.constant 0 : index
    %64 = vector.load %arg2[%c0_60, %c6, %c0_61, %c0_62] : memref<1x7x12x128xbf16, #tpu.memory_space<vmem>>, vector<1x1x12x128xbf16>
    %65 = vector.shape_cast %64 : vector<1x1x12x128xbf16> to vector<12x128xbf16>
    %66 = arith.extf %65 : vector<12x128xbf16> to vector<12x128xf32>
    %c6_63 = arith.constant 6 : index
    %c0_64 = arith.constant 0 : index
    %c0_65 = arith.constant 0 : index
    %67 = vector.load %arg3[%c6_63, %c0_64, %c0_65] : memref<7x12x128xf32, #tpu.memory_space<vmem>>, vector<1x12x128xf32>
    %68 = vector.shape_cast %67 : vector<1x12x128xf32> to vector<12x128xf32>
    %69 = arith.addf %66, %68 : vector<12x128xf32>
    %c0_66 = arith.constant 0 : index
    %c0_67 = arith.constant 0 : index
    %c0_68 = arith.constant 0 : index
    %c0_69 = arith.constant 0 : index
    %70 = vector.load %arg4[%c0_66, %c0_67, %c0_68, %c0_69] : memref<1x2x12x128xbf16, #tpu.memory_space<vmem>>, vector<1x1x12x128xbf16>
    %71 = vector.shape_cast %70 : vector<1x1x12x128xbf16> to vector<12x128xbf16>
    %72 = arith.extf %71 : vector<12x128xbf16> to vector<12x128xf32>
    %c0_70 = arith.constant 0 : index
    %c1_71 = arith.constant 1 : index
    %c0_72 = arith.constant 0 : index
    %c0_73 = arith.constant 0 : index
    %73 = vector.load %arg4[%c0_70, %c1_71, %c0_72, %c0_73] : memref<1x2x12x128xbf16, #tpu.memory_space<vmem>>, vector<1x1x12x128xbf16>
    %74 = vector.shape_cast %73 : vector<1x1x12x128xbf16> to vector<12x128xbf16>
    %75 = arith.extf %74 : vector<12x128xbf16> to vector<12x128xf32>
    %76 = arith.cmpf ogt, %75, %72 : vector<12x128xf32>
    %77 = arith.extui %76 : vector<12x128xi1> to vector<12x128xi32>
    %78 = arith.sitofp %77 : vector<12x128xi32> to vector<12x128xf32>
    %cst = arith.constant 7.853900e-01 : f32
    %79 = vector.broadcast %cst : f32 to vector<12x128xf32>
    %80 = arith.subf %69, %79 : vector<12x128xf32>
    %cst_74 = arith.constant 0.318309873 : f32
    %81 = vector.broadcast %cst_74 : f32 to vector<12x128xf32>
    %82 = arith.mulf %80, %81 : vector<12x128xf32>
    %cst_75 = arith.constant 0.000000e+00 : f32
    %83 = vector.broadcast %cst_75 : f32 to vector<12x128xf32>
    %84 = arith.addf %82, %83 : vector<12x128xf32>
    %85 = math.floor %84 : vector<12x128xf32>
    %cst_76 = arith.constant 3.14159274 : f32
    %86 = vector.broadcast %cst_76 : f32 to vector<12x128xf32>
    %87 = arith.mulf %85, %86 : vector<12x128xf32>
    %88 = arith.subf %80, %87 : vector<12x128xf32>
    %cst_77 = arith.constant 7.853900e-01 : f32
    %89 = vector.broadcast %cst_77 : f32 to vector<12x128xf32>
    %90 = arith.addf %88, %89 : vector<12x128xf32>
    %cst_78 = arith.constant 3.14159274 : f32
    %91 = vector.broadcast %cst_78 : f32 to vector<12x128xf32>
    %92 = arith.mulf %91, %78 : vector<12x128xf32>
    %93 = arith.addf %90, %92 : vector<12x128xf32>
    %c0_79 = arith.constant 0 : index
    %c6_80 = arith.constant 6 : index
    %c0_81 = arith.constant 0 : index
    %c0_82 = arith.constant 0 : index
    %94 = vector.load %arg5[%c0_79, %c6_80, %c0_81, %c0_82] : memref<1x7x12x128xf32, #tpu.memory_space<vmem>>, vector<1x1x12x128xf32>
    %95 = vector.shape_cast %94 : vector<1x1x12x128xf32> to vector<12x128xf32>
    %96 = vector.shape_cast %93 : vector<12x128xf32> to vector<1x1x12x128xf32>
    tpu.vector_store %arg5[%c0_79, %c6_80, %c0_81, %c0_82], %96 {strides = array<i32>} : memref<1x7x12x128xf32, #tpu.memory_space<vmem>>, vector<1x1x12x128xf32>,
    return
  }
  func.func @transform_0(%arg0: i32, %arg1: i32) -> (i32, i32, i32, i32) {
    %c0_i32 = arith.constant 0 : i32
    %c0_i32_0 = arith.constant 0 : i32
    %c0_i32_1 = arith.constant 0 : i32
    return %arg1, %c0_i32, %arg0, %c0_i32_0 : i32, i32, i32, i32
  }
  func.func @transform_1(%arg0: i32, %arg1: i32) -> (i32, i32, i32) {
    %c0_i32 = arith.constant 0 : i32
    %c0_i32_0 = arith.constant 0 : i32
    %c0_i32_1 = arith.constant 0 : i32
    return %c0_i32, %arg0, %c0_i32_0 : i32, i32, i32
  }
  func.func @transform_2(%arg0: i32, %arg1: i32) -> (i32, i32, i32, i32) {
    %c0_i32 = arith.constant 0 : i32
    %c0_i32_0 = arith.constant 0 : i32
    %c0_i32_1 = arith.constant 0 : i32
    return %arg1, %c0_i32, %arg0, %c0_i32_0 : i32, i32, i32, i32
  }
  func.func @transform_3(%arg0: i32, %arg1: i32) -> (i32, i32, i32, i32) {
    %c0_i32 = arith.constant 0 : i32
    %c0_i32_0 = arith.constant 0 : i32
    %c0_i32_1 = arith.constant 0 : i32
    return %arg1, %c0_i32, %arg0, %c0_i32_0 : i32, i32, i32, i32
  }
}

</mosaic_0001>

<bundles_post_ra>
// kernel: tpu_custom_call.1
= control target key start
LH: loop header
LB: loop body
LE: loop exit
PB: predicated region body
PF: predicated region fallthrough
CT: control target
= control target key end

     0   :  { %s690_s12 = smov 0   ;;  %s692_s13 = smov 0   ;;  %s880_s0 = inlined_call_operand.vmem [shape: bf16[2,7,12,128], index: 0, kind: input, shape index: {}]   ;;  %s881_s1 = inlined_call_operand.vmem [shape: f32[7,12,128], index: 1, kind: input, shape index: {}]   ;;  %s882_s2 = inlined_call_operand.vmem [shape: bf16[2,2,12,128], index: 2, kind: input, shape index: {}]   ;;  %s883_s3 = inlined_call_operand.vmem [shape: f32[2,7,12,128], index: 3, kind: output, shape index: {}]  }
   0x1   :  { %s694_s14 = smov 0  }
   0x2 LB: > { %s22_s15 = sadd.s32 1, %s663_s13  ;;  %p552_p0 = scmp.ge.s32.totalorder %s667_s14, 1  ;;  %s667_s14 = sphi %s694_s14, %s13_s14   ;;  %s663_s13 = sphi %s692_s13, %s887_s13   ;;  %s659_s12 = sphi %s690_s12, %s886_s12  }
   0x3   : > { %p23_p1 = scmp.ge.s32.totalorder %s22_s15, 2  ;;  %p186_p2 = scmp.lt.s32.totalorder %s667_s14, 3 }
   0x5   : > { %s889_s15 = smov (%p23_p1, %s22_s15), 0  ;;  %p187_p3 = pnand %p552_p0, %p186_p2 }
   0x6   : > { %p233_p4 = scmp.lt.s32.totalorder (!%p187_p3), %s659_s12, 1  ;;  %v711_v0 = vld [vmem:[%s881_s1 + $0x30] sm:$0xff] (!%p187_p3)  ;;  %v716_v1 = vld [vmem:[%s881_s1 + $0x40] sm:$0xff] (!%p187_p3)  ;;  %v725_v4 = vld [vmem:[%s881_s1 + $0x38] sm:$0xf] (!%p187_p3) }
   0x7   : > { %190 = sbr.rel (%p187_p3) target bundleno = 44 (0x2c), region = 32  ;;  %v274_v2 = vmul.f32 (!%p187_p3), %v711_v0, %v711_v0  ;;  %v276_v3 = vmul.f32 (!%p187_p3), %v716_v1, %v716_v1  ;;  %v730_v5 = vld [vmem:[%s881_s1 + $0x48] sm:$0xf] (!%p187_p3)  ;;  %v275_v6 = vmul.f32 (!%p187_p3), %v725_v4, %v725_v4  ;;  %v760_v10 = vld [vmem:[%s881_s1 + $0x50] sm:$0xff] (!%p187_p3)  ;;  %v765_v11 = vld [vmem:[%s881_s1 + $0x58] sm:$0xf] (!%p187_p3) }
   0x8   : > { %v277_v7 = vmul.f32 (!%p187_p3), %v730_v5, %v730_v5  ;;  %v571_v19 = vld [vmem:[%s881_s1 + $0x20] sm:$0xff] (!%p187_p3)  ;;  %v572_v31 = vld [vmem:[%s881_s1 + $0x28] sm:$0xf] (!%p187_p3) }
   0x9   : > { %v738_v8 = vadd.f32 (!%p187_p3), %v276_v3, %v274_v2  ;;  %v589_v37 = vld [vmem:[%s881_s1 + $0x60] sm:$0xff] (!%p187_p3)  ;;  %v590_v55 = vld [vmem:[%s881_s1 + $0x68] sm:$0xf] (!%p187_p3) }
   0xa   : > { %v741_v9 = vadd.f32 (!%p187_p3), %v277_v7, %v275_v6 }
   0xb   : > { %629 = vrsqrt.f32 (!%p187_p3), %v738_v8  ;;  %vm282_vm0 = vcmp.eq.f32.partialorder (!%p187_p3), %v738_v8, inf  ;;  %v285_v13 = vand.u32 (!%p187_p3), 2147483648, %v738_v8  ;;  %vm284_vm1 = vcmp.eq.f32.partialorder (!%p187_p3), %v738_v8, 0.0 }
   0xc   : > { %631 = vrsqrt.f32 (!%p187_p3), %v741_v9  ;;  %v292_v15 = vand.u32 (!%p187_p3), 2147483648, %v741_v9  ;;  %vm289_vm2 = vcmp.eq.f32.partialorder (!%p187_p3), %v741_v9, inf  ;;  %vm291_vm3 = vcmp.eq.f32.partialorder (!%p187_p3), %v741_v9, 0.0 }
   0xe   : > { %s891_s12 = smov (!%p233_p4, %s659_s12), 1 }
   0xf   : > { %s602_s24 = smul.u32 56, %s891_s12  ;;  %s601_s25 = sshll.u32 %s891_s12, 4 }
  0x10   : > { %s748_s28 = scalar_lea.vmem %s882_s2, %s601_s25  ;;  %s603_s5 = smul.u32 112, %s891_s12 }
  0x11   : > { %s753_s4 = scalar_lea.vmem %s880_s0, %s602_s24  ;;  %v391_v12 = vld [vmem:[%s748_s28] ss:$8 sps:$4 sm:$0xff]   ;;  %v392_v51 = vld [vmem:[%s748_s28 + $0x4] sm:$0x3]  ;;  %v592_v56 = vld [vmem:[%s748_s28 + $0xc] sm:$0x3] }
  0x12   : > { %v771_v14 = vld [vmem:[%s753_s4] ss:$8 sps:$4 sm:$0xff]   ;;  %v775_v16 = vld [vmem:[%s753_s4 + $0x4] sm:$0x3]  ;;  %v569_v18 = vld [vmem:[%s753_s4 + $0x10] ss:$8 sps:$4 sm:$0xff]   ;;  %v393_v22 = vunpack.c.l.bf16 %v391_v12  ;;  %v398_v23 = vunpack.c.h.bf16 %v391_v12  ;;  %s805_s22 = scalar_lea.vmem %s883_s3, %s603_s5  ;;  %v394_v2 = vunpack.c.l.bf16 %v392_v51  ;;  %v399_v7 = vunpack.c.l.bf16 %v592_v56 }
  0x13   : > { %v296_v17 = vunpack.c.l.bf16 %v771_v14  ;;  %v570_v20 = vld [vmem:[%s753_s4 + $0x14] sm:$0x3]  ;;  %v576_v21 = vld [vmem:[%s753_s4 + $0x1c] sm:$0x3]  ;;  %v327_v24 = vunpack.c.l.bf16 %v569_v18  ;;  %v342_v26 = vunpack.c.h.bf16 %v569_v18  ;;  %v579_v28 = vld [vmem:[%s753_s4 + $0x20] ss:$8 sps:$4 sm:$0xff]   ;;  %v297_v43 = vunpack.c.l.bf16 %v775_v16 }
  0x14   : > { %v328_v25 = vunpack.c.l.bf16 %v570_v20  ;;  %v343_v27 = vunpack.c.l.bf16 %v576_v21  ;;  %v580_v29 = vld [vmem:[%s753_s4 + $0x24] sm:$0x3]  ;;  %v584_v30 = vld [vmem:[%s753_s4 + $0x2c] sm:$0x3]  ;;  %v356_v32 = vunpack.c.l.bf16 %v579_v28  ;;  %v370_v34 = vunpack.c.h.bf16 %v579_v28  ;;  %v587_v36 = vld [vmem:[%s753_s4 + $0x30] sm:$0xf] }
  0x15   : > { %v357_v33 = vunpack.c.l.bf16 %v580_v29  ;;  %v371_v35 = vunpack.c.l.bf16 %v584_v30  ;;  %v329_v38 = vmul.f32 %v760_v10, %v327_v24  ;;  %v344_v40 = vmul.f32 1.442695, %v342_v26  ;;  %v588_v42 = vld [vmem:[%s753_s4 + $0x34] sm:$0x3]  ;;  %v562_v44 = vld [vmem:[%s753_s4 + $0xc] sm:$0x3]  ;;  %v630_v57 = vpop.eup %629 }
  0x16   : > { %v330_v39 = vmul.f32 %v765_v11, %v328_v25  ;;  %v346_v41 = vmul.f32 1.442695, %v343_v27  ;;  %v358_v45 = vmul.f32 1.442695, %v356_v32  ;;  %v384_v47 = vunpack.c.l.bf16 %v587_v36  ;;  %v632_v61 = vpop.eup %631  ;;  %v563_v21 = vld [vmem:[%s881_s1 + $0x10] sm:$0xff] }
  0x17   : > { %v360_v46 = vmul.f32 1.442695, %v357_v33  ;;  %v334_v48 = vadd.f32 %v571_v19, %v329_v38  ;;  %633 = vpow2.f32 %v344_v40  ;;  %v372_v50 = vmul.f32 1.442695, %v370_v34  ;;  %v300_v19 = vld [vmem:[%s881_s1] sm:$0xff] }
  0x18   : > { %v335_v49 = vadd.f32 %v572_v31, %v330_v39  ;;  %635 = vpow2.f32 %v346_v41  ;;  %v374_v52 = vmul.f32 1.442695, %v371_v35  ;;  %v389_v53 = vadd.f32 %v589_v37, %v384_v47  ;;  %v301_v25 = vld [vmem:[%s881_s1 + $0x8] sm:$0xf]  ;;  %v564_v27 = vld [vmem:[%s881_s1 + $0x18] sm:$0xf] }
  0x19   : > { %v385_v54 = vunpack.c.l.bf16 %v588_v42  ;;  %v309_v58 = vunpack.c.h.bf16 %v771_v14  ;;  %v310_v59 = vunpack.c.l.bf16 %v562_v44  ;;  %573 = vst [vmem:[%s805_s22 + $0x20] sm:$0xff] %v334_v48  ;;  %637 = vpow2.f32 %v358_v45 }
  0x1a   : > { %574 = vst [vmem:[%s805_s22 + $0x28] sm:$0xf] %v335_v49  ;;  %vm817_vm4 = vcmp.gt.f32.partialorder %v398_v23, %v393_v22  ;;  %v281_v62 = vmul.f32 %v630_v57, %v738_v8  ;;  %639 = vpow2.f32 %v360_v46  ;;  %v595_v63 = vadd.f32 -0.78539, %v389_v53 }
  0x1b   : > { %v288_v3 = vmul.f32 %v632_v61, %v741_v9  ;;  %641 = vpow2.f32 %v372_v50  ;;  %v390_v6 = vadd.f32 %v590_v55, %v385_v54  ;;  %v669_v22 = vmov 0.0  }
  0x1c   : > { %v283_v12 = vsel %vm282_vm0, %v738_v8, %v281_v62  ;;  %643 = vpow2.f32 %v374_v52  ;;  %v408_v16 = vmul.f32 0.31830987, %v595_v63  ;;  %v593_v23 = vsel %vm817_vm4, 1.0, %v669_v22 }
  0x1d   : > { %v286_v18 = vsel %vm284_vm1, %v285_v13, %v283_v12  ;;  %v290_v20 = vsel %vm289_vm2, %v741_v9, %v288_v3  ;;  %v596_v24 = vadd.f32 -0.78539, %v390_v6  ;;  %vm401_vm5 = vcmp.gt.f32.partialorder %v399_v7, %v394_v2 }
  0x1e   : > { %v298_v8 = vmul.f32 %v296_v17, %v286_v18  ;;  %v293_v13 = vsel %vm291_vm3, %v292_v15, %v290_v20  ;;  %v311_v26 = vmul.f32 %v309_v58, %v286_v18  ;;  %v412_v28 = vfloor.f32 %v408_v16 }
  0x1f   : > { %v299_v29 = vmul.f32 %v297_v43, %v293_v13  ;;  %v312_v14 = vmul.f32 %v310_v59, %v293_v13  ;;  %v409_v17 = vmul.f32 0.31830987, %v596_v24  ;;  %v420_v38 = vmul.f32 3.1415927, %v593_v23 }
  0x20   : > { %v302_v30 = vadd.f32 %v300_v19, %v298_v8  ;;  %v316_v9 = vadd.f32 %v563_v21, %v311_v26  ;;  %v414_v15 = vmul.f32 3.1415927, %v412_v28  ;;  %v594_v39 = vsel %vm401_vm5, 1.0, %v669_v22 }
  0x21   : > { %v634_v31 = vpop.eup %633  ;;  %v303_v32 = vadd.f32 %v301_v25, %v299_v29  ;;  %v317_v33 = vadd.f32 %v564_v27, %v312_v14  ;;  %v413_v34 = vfloor.f32 %v409_v17  ;;  %v421_v48 = vmul.f32 3.1415927, %v594_v39 }
  0x22   : > { %v636_v35 = vpop.eup %635  ;;  %304 = vst [vmem:[%s805_s22] sm:$0xff] %v302_v30  ;;  %565 = vst [vmem:[%s805_s22 + $0x10] sm:$0xff] %v316_v9  ;;  %v348_v36 = vmul.f32 %v634_v31, %v711_v0  ;;  %v416_v37 = vsub.f32 %v595_v63, %v414_v15 }
  0x23   : > { %v638_v40 = vpop.eup %637  ;;  %305 = vst [vmem:[%s805_s22 + $0x8] sm:$0xf] %v303_v32  ;;  %566 = vst [vmem:[%s805_s22 + $0x18] sm:$0xf] %v317_v33  ;;  %v349_v41 = vmul.f32 %v636_v35, %v725_v4  ;;  %v415_v42 = vmul.f32 3.1415927, %v413_v34 }
  0x24   : > { %v640_v43 = vpop.eup %639  ;;  %577 = vst [vmem:[%s805_s22 + $0x30] sm:$0xff] %v348_v36  ;;  %v362_v44 = vmul.f32 %v638_v40, %v716_v1  ;;  %v418_v45 = vadd.f32 0.78539, %v416_v37 }
  0x25   : > { %v642_v0 = vpop.eup %641  ;;  %578 = vst [vmem:[%s805_s22 + $0x38] sm:$0xf] %v349_v41  ;;  %v363_v46 = vmul.f32 %v640_v43, %v730_v5  ;;  %v417_v47 = vsub.f32 %v596_v24, %v415_v42 }
  0x26   : > { %v644_v49 = vpop.eup %643  ;;  %581 = vst [vmem:[%s805_s22 + $0x40] sm:$0xff] %v362_v44  ;;  %v376_v4 = vmul.f32 %v642_v0, %v760_v10  ;;  %v422_v50 = vadd.f32 %v420_v38, %v418_v45 }
  0x27   : > { %582 = vst [vmem:[%s805_s22 + $0x48] sm:$0xf] %v363_v46  ;;  %v377_v51 = vmul.f32 %v644_v49, %v765_v11  ;;  %v419_v52 = vadd.f32 0.78539, %v417_v47 }
  0x28   : > { %585 = vst [vmem:[%s805_s22 + $0x50] sm:$0xff] %v376_v4  ;;  %597 = vst [vmem:[%s805_s22 + $0x60] sm:$0xff] %v422_v50 }
  0x29   : > { %586 = vst [vmem:[%s805_s22 + $0x58] sm:$0xf] %v377_v51  ;;  %v423_v1 = vadd.f32 %v421_v48, %v419_v52 }
  0x2b   : > { %598 = vst [vmem:[%s805_s22 + $0x68] sm:$0xf] %v423_v1 }
  0x2c PF: > { %s13_s14 = sadd.s32 1, %s667_s14   ;;  %s886_s12 = smov %s663_s13 }
  0x2d   : > { %p10_p5 = scmp.ge.s32.totalorder %s13_s14, 4   ;;  %s887_s13 = smov %s889_s15 }
  0x2f   :  { %12 = sbr.rel (!%p10_p5) target bundleno = 2 (0x2), region = 87 }

</bundles_post_ra>
